<compile_context>
chip_gen: v7x
topology: tpu7x:2x2x1
jax: 0.10.0
libtpu: 0.0.40
codegen_flags: <defaults>
</compile_context>

<pallas_src>
import jax
import jax.numpy as jnp
from jax.experimental import pallas as pl
from jax.experimental.pallas import tpu as pltpu


def _make_ntimes_tanh_kernel(n: float):
    def kernel(x_ref, o_ref):
        # Pure elementwise: EUP tanh + VPU scalar multiply.
        o_ref[...] = jnp.tanh(x_ref[...]) * n
    return kernel


def ntimes_tanh(x: jax.Array, N: float, *,
                target_block_bytes: int = 1 << 20) -> jax.Array:
    """Computes tanh(x) * N with a Pallas TPU kernel. Works for any shape."""
    orig_shape = x.shape
    dtype = x.dtype
    total = x.size
    if total == 0:
        return x

    lanes = 128

    # ---- Layout: lane-dense (rows, W) slab, no HBM copy when possible.
    W = None
    for cand in (1024, 512, 256, 128):
        if total % cand == 0:
            W = cand
            break

    if W is not None:
        rows = total // W
        slab = x.reshape(rows, W)          # free contiguous reshape
        padded = False
    else:
        # Ragged path: pad only the tail of the flattened array to a full
        # 128-lane row.
        W = lanes
        rows = pl.cdiv(total, lanes)
        flat = jnp.pad(x.reshape(-1), (0, rows * lanes - total))
        slab = flat.reshape(rows, W)
        padded = True

    # ---- Tile sizing: ~1 MiB per input tile, sublane dim a multiple of 8,
    # clamped so tiny inputs use a single full-array block.
    bpe = jnp.dtype(dtype).itemsize
    target_rows = max(8, ((target_block_bytes // (W * bpe)) // 8) * 8)
    block_rows = rows if rows <= target_rows else target_rows

    grid = (pl.cdiv(rows, block_rows),)

    out = pl.pallas_call(
        _make_ntimes_tanh_kernel(float(N)),
        out_shape=jax.ShapeDtypeStruct((rows, W), dtype),
        grid_spec=pl.GridSpec(
            grid=grid,
            in_specs=[pl.BlockSpec((block_rows, W), lambda i: (i, 0))],
            out_specs=pl.BlockSpec((block_rows, W), lambda i: (i, 0)),
        ),
        compiler_params=pltpu.CompilerParams(
            dimension_semantics=("parallel",)),
    )(slab)

    if padded:
        out = out.reshape(-1)[:total]
    return out.reshape(orig_shape)


if __name__ == "__main__":
    key = jax.random.PRNGKey(0)
    # Small NCHW activation tensor consistent with a conv-net forward pass.
    x = jax.random.normal(key, (2, 4, 16, 16), dtype=jnp.float32)
    N = 3.0  # the module's constructor argument

    y = ntimes_tanh(x, N)
    y = jax.block_until_ready(y)

    # Correctness check against the plain-JAX reference.
    ref = jnp.tanh(x) * N
    assert y.shape == x.shape and y.dtype == x.dtype
    assert jnp.allclose(y, ref, atol=1e-6, rtol=1e-6)

    # Also exercise a ragged size (hits the padded path).
    x2 = jax.random.normal(jax.random.PRNGKey(1), (3, 5, 7), dtype=jnp.float32)
    y2 = jax.block_until_ready(ntimes_tanh(x2, N))
    assert jnp.allclose(y2, jnp.tanh(x2) * N, atol=1e-6, rtol=1e-6)

    print("KERNEL_OK")
</pallas_src>

<mosaic_0001>
module attributes {stable_mosaic.version = 11 : i64} {
  func.func @kernel(%arg0: i32, %arg1: memref<2x1024xf32, #tpu.memory_space<vmem>>, %arg2: memref<2x1024xf32, #tpu.memory_space<vmem>>) attributes {dimension_semantics = [#tpu.dimension_semantics<parallel>], iteration_bounds = array<i64: 1>, scalar_prefetch = 0 : i64, scratch_operands = 0 : i64, tpu.core_type = #tpu.core_type<tc>, window_params = [{transform_indices = @transform_0, window_bounds = array<i64: 2, 1024>}, {transform_indices = @transform_1, window_bounds = array<i64: 2, 1024>}]} {
    %c0 = arith.constant 0 : index
    %c0_0 = arith.constant 0 : index
    %0 = vector.load %arg1[%c0, %c0_0] : memref<2x1024xf32, #tpu.memory_space<vmem>>, vector<2x1024xf32>
    %1 = math.tanh %0 : vector<2x1024xf32>
    %cst = arith.constant 3.000000e+00 : f32
    %2 = vector.broadcast %cst : f32 to vector<2x1024xf32>
    %3 = arith.mulf %1, %2 : vector<2x1024xf32>
    %c0_1 = arith.constant 0 : index
    %c0_2 = arith.constant 0 : index
    %4 = vector.load %arg2[%c0_1, %c0_2] : memref<2x1024xf32, #tpu.memory_space<vmem>>, vector<2x1024xf32>
    tpu.vector_store %arg2[%c0_1, %c0_2], %3 {strides = array<i32>} : memref<2x1024xf32, #tpu.memory_space<vmem>>, vector<2x1024xf32>,
    return
  }
  func.func @transform_0(%arg0: i32) -> (i32, i32) {
    %c0_i32 = arith.constant 0 : i32
    %c0_i32_0 = arith.constant 0 : i32
    return %arg0, %c0_i32 : i32, i32
  }
  func.func @transform_1(%arg0: i32) -> (i32, i32) {
    %c0_i32 = arith.constant 0 : i32
    %c0_i32_0 = arith.constant 0 : i32
    return %arg0, %c0_i32 : i32, i32
  }
}

</mosaic_0001>

<bundles_post_ra>
// kernel: tpu_custom_call.1
= control target key start
LH: loop header
LB: loop body
LE: loop exit
PB: predicated region body
PF: predicated region fallthrough
CT: control target
= control target key end

     0   :  { %6 = vsyncpa [#allocation3], 0  ;;  %s134_s0 = inlined_call_operand.hbm [shape: f32[2,1024], index: 0, kind: input, shape index: {}]   ;;  %s135_s1 = inlined_call_operand.hbm [shape: f32[2,1024], index: 1, kind: output, shape index: {}]  }
   0x1   :  { %7 = vsyncpa [#allocation4], 0  ;;  %s98_s6 = smov [#allocation2]   ;;  %s50_s10 = scalar_lea.hbm %s134_s0, 256 }
   0x2   :  { %s14_s7 = sshll.u32 %s98_s6, 4  ;;  %p51_p0 = scmp.ne.s32.totalorder %s134_s0, %s50_s10  ;;  %s15_s7 = int_to_ptr.vmem [resolvable:$true] %s14_s7 }
   0x3   :  { %p54_p1 = scmp.lt.u32.totalorder %s50_s10, %s134_s0 }
   0x5   :  { %p56_p2 = pnand %p54_p1, %p51_p0 }
   0x7   :  { %59 = shalt.err (!%p56_p2)
}
   0x8   :  { %s60_s15 = scalar_lea.vmem %s15_s7, 256  ;;  %p65_p4 = scmp.lt.s32.totalorder %s15_s7, %s15_s7 }
   0x9   :  { %p61_p3 = scmp.ne.s32.totalorder %s15_s7, %s60_s15  ;;  %p66_p5 = scmp.lt.s32.totalorder %s60_s15, %s60_s15 }
   0xb   :  { %p67_p6 = por %p66_p5, %p65_p4 }
   0xd   :  { %p68_p7 = pnand %p67_p6, %p61_p3 }
   0xf   :  { %71 = shalt.err (!%p68_p7)
}
  0x10   :  { %17 = dma.hbm_to_vmem [thread:$0]  %s134_s0, 256, %s15_s7, [#allocation3]  }
  0x11   :  { %94 = dma.done.wait [#allocation3], 256  }
  0x12   :  { %95 = vsyncadd [#allocation3], 4294967040  ;;  %v21_v0 = vld [vmem:[#allocation2] sm:$0xff]  ;;  %v22_v1 = vld [vmem:[#allocation2 + $0x8] sm:$0xff]  ;;  %s99_s18 = smov [#allocation5]  }
  0x13   :  { %46 = vtanh.f32 %v21_v0  ;;  %s35_s19 = sshll.u32 %s99_s18, 4  ;;  %s36_s19 = int_to_ptr.vmem [resolvable:$true] %s35_s19 }
  0x14   :  { %48 = vtanh.f32 %v22_v1  ;;  %s72_s20 = scalar_lea.vmem %s36_s19, 256  ;;  %p77_p9 = scmp.lt.s32.totalorder %s36_s19, %s36_s19 }
  0x15   :  { %p73_p8 = scmp.ne.s32.totalorder %s36_s19, %s72_s20  ;;  %p78_p10 = scmp.lt.s32.totalorder %s72_s20, %s72_s20 }
  0x17   :  { %p79_p11 = por %p78_p10, %p77_p9 }
  0x19   :  { %p80_p12 = pnand %p79_p11, %p73_p8 }
  0x1d   :  { %v47_v2 = vpop.eup %46 }
  0x1e   :  { %v49_v3 = vpop.eup %48  ;;  %v25_v4 = vmul.f32 3.0, %v47_v2 }
  0x1f   :  { %v26_v5 = vmul.f32 3.0, %v49_v3 }
  0x20   :  { %27 = vst [vmem:[#allocation5] sm:$0xff] %v25_v4 }
  0x21   :  { %28 = vst [vmem:[#allocation5 + $0x8] sm:$0xff] %v26_v5 }
  0x22   :  { %83 = shalt.err (!%p80_p12)
}
  0x23   :  { %s84_s22 = scalar_lea.hbm %s135_s1, 256 }
  0x24   :  { %p85_p13 = scmp.ne.s32.totalorder %s135_s1, %s84_s22  ;;  %p88_p0 = scmp.lt.u32.totalorder %s84_s22, %s135_s1 }
  0x26   :  { %p90_p1 = pnand %p88_p0, %p85_p13 }
  0x28   :  { %93 = shalt.err (!%p90_p1)
}
  0x29   :  { %38 = dma.vmem_to_hbm [thread:$0]  %s36_s19, 256, %s135_s1, [#allocation4]  }
  0x2a   :  { %96 = dma.done.wait [#allocation4], 256  }
  0x2b   :  { %97 = vsyncadd [#allocation4], 4294967040 }
  0x2c   :  { %42 = vsyncpa [#allocation3], 1 }
  0x2d   :  { %43 = vsyncpa [#allocation4], 1 }

</bundles_post_ra>
